<compile_context>
chip_gen: v5e
topology: v5e:2x2
jax: 0.10.0
libtpu: 0.0.40
codegen_flags: <defaults>
</compile_context>

<pallas_src>
import functools

import jax
import jax.numpy as jnp
from jax.experimental import pallas as pl
from jax.experimental.pallas import tpu as pltpu


def _category_loss_kernel(logits_ref, labels_ref, out_ref, *,
                          n_rows, tile_rows, tiles_per_split):
    s = pl.program_id(0)      # split (TensorCore shard) index
    i = pl.program_id(1)      # row-tile index within the split

    @pl.when(i == 0)
    def _():
        out_ref[...] = jnp.zeros_like(out_ref)

    x = logits_ref[...].astype(jnp.float32)        # (TILE_ROWS, C) f32
    lab = labels_ref[...]                          # (TILE_ROWS, 1) i32

    # One-hot target folded into a single select: x*onehot == where(col==lab, x, 0)
    col = jax.lax.broadcasted_iota(jnp.int32, x.shape, dimension=1)
    sel = jnp.where(col == lab, x, 0.0)

    # Numerically-stable BCE with logits (matches torch.nn.BCEWithLogitsLoss):
    #   l(x, y) = max(x, 0) - x*y + log(1 + exp(-|x|))
    per_elem = jnp.maximum(x, 0.0) - sel + jnp.log1p(jnp.exp(-jnp.abs(x)))

    # Mask rows that are padding (ragged last tile) or past the array entirely.
    row = jax.lax.broadcasted_iota(jnp.int32, x.shape, dimension=0)
    global_row = (s * tiles_per_split + i) * tile_rows + row
    per_elem = jnp.where(global_row < n_rows, per_elem, 0.0)

    out_ref[...] += jnp.sum(per_elem, axis=(0, 1), keepdims=True)


def _choose_tile_rows(n, c, itemsize):
    # Target ~2 MiB per logits buffer; with default double-buffering that is
    # ~4 MiB for logits (+ tiny label buffers), comfortably inside the scoped
    # VMEM default on every generation (16 MiB v5e, 32 MiB v6e/v7x).
    target_bytes = 2 * 1024 * 1024
    rows = max(8, min(1024, target_bytes // max(1, c * itemsize)))
    rows = (rows // 8) * 8
    n_pad = ((n + 7) // 8) * 8
    return max(8, min(rows, n_pad))


def category_loss(category_logits, labels, *, tile_rows=None):
    """category_logits: (N, C) float, labels: (N,) int -> scalar f32 mean BCE loss."""
    n, c = category_logits.shape
    labels2d = labels.astype(jnp.int32).reshape(n, 1)

    itemsize = jnp.dtype(category_logits.dtype).itemsize
    if tile_rows is None:
        tile_rows = _choose_tile_rows(n, c, itemsize)

    total_tiles = pl.cdiv(n, tile_rows)
    # Two "parallel" shards so v7x's two TensorCores split the row stream
    # (each has its own EUP for the exp/log1p). Harmless on single-TC chips.
    splits = 2 if total_tiles >= 2 else 1
    tiles_per_split = pl.cdiv(total_tiles, splits)

    kernel = functools.partial(
        _category_loss_kernel,
        n_rows=n, tile_rows=tile_rows, tiles_per_split=tiles_per_split)

    partials = pl.pallas_call(
        kernel,
        out_shape=jax.ShapeDtypeStruct((splits, 1), jnp.float32),
        grid_spec=pltpu.PrefetchScalarGridSpec(
            num_scalar_prefetch=0,
            grid=(splits, tiles_per_split),
            in_specs=[
                pl.BlockSpec((tile_rows, c),
                             lambda s, i: (s * tiles_per_split + i, 0)),
                pl.BlockSpec((tile_rows, 1),
                             lambda s, i: (s * tiles_per_split + i, 0)),
            ],
            out_specs=pl.BlockSpec((1, 1), lambda s, i: (s, 0)),
        ),
        compiler_params=pltpu.CompilerParams(
            dimension_semantics=("parallel", "arbitrary")),
    )(category_logits, labels2d)

    # Single global divide -> exact BCEWithLogitsLoss(reduction='mean').
    return jnp.sum(partials) / jnp.float32(n * c)


def _reference(category_logits, labels):
    c = category_logits.shape[1]
    y = jax.nn.one_hot(labels, c, dtype=jnp.float32)
    x = category_logits.astype(jnp.float32)
    per = jnp.maximum(x, 0.0) - x * y + jnp.log1p(jnp.exp(-jnp.abs(x)))
    return jnp.mean(per)


if __name__ == "__main__":
    key = jax.random.PRNGKey(0)

    # 1) Module-scale shape: batch=8, category_num=16 (single tile).
    N, C = 8, 16
    k_logits, k_labels, k2_logits, k2_labels = jax.random.split(key, 4)
    logits = jax.random.normal(k_logits, (N, C), dtype=jnp.float32)
    labels = jax.random.randint(k_labels, (N,), 0, C, dtype=jnp.int32)
    loss = category_loss(logits, labels)
    jax.block_until_ready(loss)
    ref = _reference(logits, labels)
    assert jnp.allclose(loss, ref, atol=1e-5, rtol=1e-5), (loss, ref)

    # 2) Ragged N with a forced small tile: exercises the 2-D (parallel,
    #    arbitrary) grid, the per-split accumulators, and the row masking of
    #    the padded last tile.
    N2, C2 = 44, 16
    logits2 = jax.random.normal(k2_logits, (N2, C2), dtype=jnp.float32)
    labels2 = jax.random.randint(k2_labels, (N2,), 0, C2, dtype=jnp.int32)
    loss2 = category_loss(logits2, labels2, tile_rows=8)
    jax.block_until_ready(loss2)
    ref2 = _reference(logits2, labels2)
    assert jnp.allclose(loss2, ref2, atol=1e-5, rtol=1e-5), (loss2, ref2)

    print("KERNEL_OK")
</pallas_src>

<mosaic_0001>
module attributes {stable_mosaic.version = 11 : i64} {
  func.func @_category_loss_kernel(%arg0: i32, %arg1: i32, %arg2: memref<8x16xf32, #tpu.memory_space<vmem>>, %arg3: memref<8x1xi32, #tpu.memory_space<vmem>>, %arg4: memref<1x1xf32, #tpu.memory_space<vmem>>) attributes {dimension_semantics = [#tpu.dimension_semantics<parallel>, #tpu.dimension_semantics<arbitrary>], iteration_bounds = array<i64: 1, 1>, scalar_prefetch = 0 : i64, scratch_operands = 0 : i64, tpu.core_type = #tpu.core_type<tc>, window_params = [{transform_indices = @transform_0, window_bounds = array<i64: 8, 16>}, {transform_indices = @transform_1, window_bounds = array<i64: 8, 1>}, {transform_indices = @transform_2, window_bounds = array<i64: 1, 1>}]} {
    %c0_i32 = arith.constant 0 : i32
    %0 = arith.cmpi eq, %arg1, %c0_i32 : i32
    %1 = arith.extui %0 : i1 to i32
    %c0_i32_0 = arith.constant 0 : i32
    %2 = arith.cmpi ne, %1, %c0_i32_0 : i32
    scf.if %2 {
      %cst_13 = arith.constant 0.000000e+00 : f32
      %37 = vector.broadcast %cst_13 : f32 to vector<1x1xf32>
      %c0_14 = arith.constant 0 : index
      %c0_15 = arith.constant 0 : index
      %38 = vector.load %arg4[%c0_14, %c0_15] : memref<1x1xf32, #tpu.memory_space<vmem>>, vector<1x1xf32>
      tpu.vector_store %arg4[%c0_14, %c0_15], %37 {strides = array<i32>} : memref<1x1xf32, #tpu.memory_space<vmem>>, vector<1x1xf32>,
    } else {
    }
    %c0 = arith.constant 0 : index
    %c0_1 = arith.constant 0 : index
    %3 = vector.load %arg2[%c0, %c0_1] : memref<8x16xf32, #tpu.memory_space<vmem>>, vector<8x16xf32>
    %c0_2 = arith.constant 0 : index
    %c0_3 = arith.constant 0 : index
    %4 = vector.load %arg3[%c0_2, %c0_3] : memref<8x1xi32, #tpu.memory_space<vmem>>, vector<8x1xi32>
    %5 = tpu.iota {dimensions = array<i32: 1>} : vector<8x16xi32>
    %6 = vector.broadcast %4 : vector<8x1xi32> to vector<8x16xi32>
    %7 = arith.cmpi eq, %5, %6 : vector<8x16xi32>
    %cst = arith.constant 0.000000e+00 : f32
    %8 = vector.broadcast %cst : f32 to vector<8x16xf32>
    %9 = arith.select %7, %3, %8 : vector<8x16xi1>, vector<8x16xf32>
    %cst_4 = arith.constant 0.000000e+00 : f32
    %10 = vector.broadcast %cst_4 : f32 to vector<8x16xf32>
    %11 = arith.maximumf %3, %10 : vector<8x16xf32>
    %12 = arith.subf %11, %9 : vector<8x16xf32>
    %13 = math.absf %3 : vector<8x16xf32>
    %cst_5 = arith.constant 0.000000e+00 : f32
    %14 = vector.broadcast %cst_5 : f32 to vector<8x16xf32>
    %15 = arith.subf %14, %13 : vector<8x16xf32>
    %16 = math.exp %15 : vector<8x16xf32>
    %17 = math.log1p %16 : vector<8x16xf32>
    %18 = arith.addf %12, %17 : vector<8x16xf32>
    %19 = tpu.iota {dimensions = array<i32: 0>} : vector<8x16xi32>
    %c1_i32 = arith.constant 1 : i32
    %20 = arith.muli %arg0, %c1_i32 : i32
    %21 = arith.addi %20, %arg1 : i32
    %c8_i32 = arith.constant 8 : i32
    %22 = arith.muli %21, %c8_i32 : i32
    %23 = vector.broadcast %22 : i32 to vector<8x16xi32>
    %24 = arith.addi %23, %19 : vector<8x16xi32>
    %c8_i32_6 = arith.constant 8 : i32
    %25 = vector.broadcast %c8_i32_6 : i32 to vector<8x16xi32>
    %26 = arith.cmpi slt, %24, %25 : vector<8x16xi32>
    %cst_7 = arith.constant 0.000000e+00 : f32
    %27 = vector.broadcast %cst_7 : f32 to vector<8x16xf32>
    %28 = arith.select %26, %18, %27 : vector<8x16xi1>, vector<8x16xf32>
    %c0_8 = arith.constant 0 : index
    %c0_9 = arith.constant 0 : index
    %29 = vector.load %arg4[%c0_8, %c0_9] : memref<1x1xf32, #tpu.memory_space<vmem>>, vector<1x1xf32>
    %30 = vector.shape_cast %28 : vector<8x16xf32> to vector<1x8x16xf32>
    %cst_10 = arith.constant dense<0.000000e+00> : vector<1xf32>
    %31 = vector.multi_reduction <add>, %30, %cst_10 [1, 2] : vector<1x8x16xf32> to vector<1xf32>
    %32 = vector.shape_cast %31 : vector<1xf32> to vector<1x1x1xf32>
    %33 = vector.extract %32[0, 0, 0] : f32 from vector<1x1x1xf32>
    %34 = vector.broadcast %33 : f32 to vector<1x1xf32>
    %35 = arith.addf %29, %34 : vector<1x1xf32>
    %c0_11 = arith.constant 0 : index
    %c0_12 = arith.constant 0 : index
    %36 = vector.load %arg4[%c0_11, %c0_12] : memref<1x1xf32, #tpu.memory_space<vmem>>, vector<1x1xf32>
    tpu.vector_store %arg4[%c0_11, %c0_12], %35 {strides = array<i32>} : memref<1x1xf32, #tpu.memory_space<vmem>>, vector<1x1xf32>,
    return
  }
  func.func @transform_0(%arg0: i32, %arg1: i32) -> (i32, i32) {
    %c1_i32 = arith.constant 1 : i32
    %0 = arith.muli %arg0, %c1_i32 : i32
    %1 = arith.addi %0, %arg1 : i32
    %c0_i32 = arith.constant 0 : i32
    %c0_i32_0 = arith.constant 0 : i32
    return %1, %c0_i32 : i32, i32
  }
  func.func @transform_1(%arg0: i32, %arg1: i32) -> (i32, i32) {
    %c1_i32 = arith.constant 1 : i32
    %0 = arith.muli %arg0, %c1_i32 : i32
    %1 = arith.addi %0, %arg1 : i32
    %c0_i32 = arith.constant 0 : i32
    %c0_i32_0 = arith.constant 0 : i32
    return %1, %c0_i32 : i32, i32
  }
  func.func @transform_2(%arg0: i32, %arg1: i32) -> (i32, i32) {
    %c0_i32 = arith.constant 0 : i32
    %c0_i32_0 = arith.constant 0 : i32
    return %arg0, %c0_i32 : i32, i32
  }
}

</mosaic_0001>

<bundles_post_ra>
// kernel: tpu_custom_call.1
= control target key start
LH: loop header
LB: loop body
LE: loop exit
PB: predicated region body
PF: predicated region fallthrough
CT: control target
= control target key end

     0   :  { %s194_s0 = inlined_call_operand.vmem [shape: f32[8,16], index: 0, kind: input, shape index: {}]   ;;  %s195_s1 = inlined_call_operand.vmem [shape: s32[8,1], index: 1, kind: input, shape index: {}]   ;;  %s196_s2 = inlined_call_operand.hbm [shape: f32[1,1], index: 2, kind: output, shape index: {}]  }
   0x1   :  { %v53_v0 = vld [vmem:[%s195_s1] sm:$0xff] }
   0x2   :  { %7 = vsyncpa [#allocation3], 0  ;;  %v165_v1 = vmov 0   ;;  %v52_v2 = vld [vmem:[%s194_s0] sm:$0xff]  ;;  %v54_v9 = vlaneseq  ;;  %vm86_vm2 = vcmask 130048   ;;  %vm50_vm3 = vcmask 0  }
   0x3   :  { %134 = vset.pattern.permute.xlu0 %v165_v1  ;;  %v63_v3 = vand.u32 2147483647, %v52_v2  ;;  %v61_v16 = vmax.f32 %v52_v2, 0.0  ;;  %v166_v23 = vmov 0.0   ;;  %s167_s0 = smov [#allocation2]   ;;  %s108_s15 = sshll.u32 %s196_s2, 4  ;;  %s109_s15 = int_to_ptr.hbm [resolvable:$true] %s108_s15 }
   0x4   :  { %57 = vperm.xlu0 %134, %v53_v0   ;;  %v55_v13 = vand.u32 127, %v54_v9  ;;  %51 = vst.msk [vmem:[#allocation2] sm:$0x1] %vm50_vm3, %v166_v23  ;;  %s106_s1 = sshll.u32 %s167_s0, 4  ;;  %s107_s1 = int_to_ptr.vmem [resolvable:$true] %s106_s1 }
   0x5   :  { %v64_v4 = vsub.f32 0.0, %v63_v3 }
   0x7   :  { %v65_v5 = vmul.f32 1.442695, %v64_v4 }
   0x9   :  { %135 = vpow2.f32 %v65_v5 }
   0xb   :  { %v85_v31 = vld [vmem:[#allocation2] sm:$0x1] }
   0xf   :  { %v136_v6 = vpop.eup %135 }
  0x10   :  { %v67_v7 = vadd.f32 1.0, %v136_v6  ;;  %v70_v8 = vmul.f32 -0.5, %v136_v6  ;;  %v73_v12 = vand.u32 2147483647, %v136_v6 }
  0x12   :  { %137 = vlog2.f32 %v67_v7  ;;  %v71_v10 = vadd.f32 1.0, %v70_v8  ;;  %vm74_vm0 = vcmp.lt.f32.partialorder %v73_v12, 0.0004427343 }
  0x14   :  { %v72_v15 = vmul.f32 %v136_v6, %v71_v10 }
  0x18   :  { %v138_v11 = vpop.eup %137 }
  0x19   :  { %v69_v14 = vmul.f32 0.6931472, %v138_v11 }
  0x1b   :  { %v75_v19 = vsel %vm74_vm0, %v72_v15, %v69_v14 }
  0x76   :  { %v58_v17 = vpop.permute.xlu0 %57 }
  0x77   :  { %vm59_vm1 = vcmp.eq.s32.totalorder %v55_v13, %v58_v17 }
  0x78   :  { %v60_v18 = vsel %vm59_vm1, %v52_v2, 0.0 }
  0x79   :  { %v62_v20 = vsub.f32 %v61_v16, %v60_v18 }
  0x7b   :  { %v76_v21 = vadd.f32 %v75_v19, %v62_v20 }
  0x7d   :  { %v87_v22 = vsel %vm86_vm2, %v76_v21, 0.0 }
  0x7e   :  { %88 = vadd.xlane.f32.xlu0 %v87_v22 }
  0xf1   :  { %v89_v24 = vpop.xlane.xlu0 %88 }
  0xf2   :  { %v90_v25 = vrot.slane %v89_v24, 4 }
  0xf4   :  { %v91_v26 = vadd.f32 %v90_v25, %v89_v24 }
  0xf6   :  { %v92_v27 = vrot.slane %v91_v26, 2 }
  0xf8   :  { %v93_v28 = vadd.f32 %v92_v27, %v91_v26 }
  0xfa   :  { %v94_v29 = vrot.slane %v93_v28, 1 }
  0xfc   :  { %v95_v30 = vadd.f32 %v94_v29, %v93_v28 }
  0xfe   :  { %129 = vpush %v95_v30 }
 0x12f   :  { %s130_s16 = spop %129 }
 0x130   :  { %v97_v32 = vstv %s130_s16 }
 0x131   :  { %v98_v33 = vadd.f32 %v97_v32, %v85_v31 }
 0x133   :  { %100 = vst.msk [vmem:[#allocation2] sm:$0x1] %vm50_vm3, %v98_v33 }
 0x134   :  { %111 = dma.vmem_to_hbm [thread:$0]  %s107_s1, 16, %s109_s15, [#allocation3]  }
 0x135   :  { %163 = dma.done.wait [#allocation3], 16  }
 0x136   :  { %164 = vsyncadd [#allocation3], 4294967280 }
 0x137   :  { %116 = vsyncpa [#allocation3], 1 }

</bundles_post_ra>
